<compile_context>
chip_gen: v5e
topology: v5e:2x2
jax: 0.10.0
libtpu: 0.0.40
codegen_flags: <defaults>
</compile_context>

<pallas_src>
import jax
import jax.numpy as jnp
from jax import lax
from jax.experimental import pallas as pl
from jax.experimental.pallas import tpu as pltpu


def mlp_kernel(x_ref, w1_ref, b1_ref, w2_ref, b2_ref, o_ref):
    # x_ref : (tb, IN)    one batch tile (any input dtype; cast in-VMEM below)
    # w1_ref: (HID, IN)   torch layout, pre-cast to compute dtype at init
    # b1_ref: (HID, 1)    f32
    # w2_ref: (OUT, HID)  torch layout, pre-cast to compute dtype at init
    # b2_ref: (OUT, 1)    f32
    # o_ref : (OUT, tb)   batch-on-lane (lane-dense) output tile
    x = x_ref[...].astype(w1_ref.dtype)                      # in-VMEM cast (no extra HBM pass)
    # h = w1 @ x.T : contract IN (last dim of both operands) -> (HID, tb)
    h = lax.dot_general(
        w1_ref[...], x,
        dimension_numbers=(((1,), (1,)), ((), ())),
        preferred_element_type=jnp.float32,
    )
    h = jnp.tanh(h + b1_ref[...])                            # f32 bias + tanh (EUP)
    # y = w2 @ h : canonical (OUT, HID) x (HID, tb) -> (OUT, tb)
    y = lax.dot_general(
        w2_ref[...], h.astype(w2_ref.dtype),
        dimension_numbers=(((1,), (0,)), ((), ())),
        preferred_element_type=jnp.float32,
    )
    o_ref[...] = (y + b2_ref[...]).astype(o_ref.dtype)


def _round_up(n, m):
    return ((n + m - 1) // m) * m


def prepare_params(w1, b1, w2, b2, *, compute_dtype=jnp.bfloat16):
    """One-time parameter prep (call at init, NOT per forward call).

    w1: (HID, IN), b1: (HID,), w2: (OUT, HID), b2: (OUT,)  -- torch Linear layout.
    Weights are cast to the MXU compute dtype; biases kept f32 as (F, 1) columns
    so they broadcast along the lane (batch) axis inside the kernel.
    """
    w1_p = w1.astype(compute_dtype)
    w2_p = w2.astype(compute_dtype)
    b1_p = b1.reshape(-1, 1).astype(jnp.float32)
    b2_p = b2.reshape(-1, 1).astype(jnp.float32)
    return (w1_p, b1_p, w2_p, b2_p)


# Below this batch size a single grid step is fastest on every generation
# (the grid is a serial loop on v5e/v6e; splitting only pays on v7x once each
# half-step is big enough to amortize the ~0.35us per-step overhead).
_SINGLE_STEP_MAX_B = 4096
_DEFAULT_LARGE_TB = 2048  # multiple of 128 -> lane-dense output tiles


def mlp_forward(x, params, *, tb=None):
    """x: (B, IN) -> (B, OUT).  params from prepare_params()."""
    w1, b1c, w2, b2c = params
    B, IN = x.shape
    HID, IN2 = w1.shape
    OUT, HID2 = w2.shape
    assert IN == IN2 and HID == HID2

    # --- Batch tiling policy (see header).
    if tb is None:
        tb = B if B <= _SINGLE_STEP_MAX_B else _DEFAULT_LARGE_TB
    if tb >= B:
        tb = B                                   # single step, full-array blocks, no padding
    else:
        tb = max(128, _round_up(tb, 128))        # lane-dense (OUT, tb) output tiles

    B_P = _round_up(B, tb)
    x_in = x
    if B_P != B:
        # Only hit for large, ragged B (single-step path never pads).
        # TODO(synk): for producers that can, emit x pre-padded (or use
        # CompilerParams(allow_input_fusion=[0])) to avoid this extra HBM pass.
        x_in = jnp.pad(x, ((0, B_P - B), (0, 0)))

    grid = (B_P // tb,)
    out_t = pl.pallas_call(
        mlp_kernel,
        out_shape=jax.ShapeDtypeStruct((OUT, B_P), x.dtype),
        grid_spec=pltpu.PrefetchScalarGridSpec(
            num_scalar_prefetch=0,
            grid=grid,
            in_specs=[
                pl.BlockSpec((tb, IN), lambda i: (i, 0)),     # x tile over batch
                pl.BlockSpec((HID, IN), lambda i: (0, 0)),    # w1 resident
                pl.BlockSpec((HID, 1), lambda i: (0, 0)),     # b1 resident
                pl.BlockSpec((OUT, HID), lambda i: (0, 0)),   # w2 resident
                pl.BlockSpec((OUT, 1), lambda i: (0, 0)),     # b2 resident
            ],
            out_specs=pl.BlockSpec((OUT, tb), lambda i: (0, i)),
        ),
        compiler_params=pltpu.CompilerParams(
            dimension_semantics=("parallel",),   # lets v7x's 2 TCs split large-B grids
        ),
    )(x_in, w1, b1c, w2, b2c)

    # (OUT, B_P) -> (B, OUT): drop padded batch columns, cheap small transpose.
    return out_t[:, :B].T


def mlp_reference(x, w1, b1, w2, b2):
    h = jnp.tanh(x @ w1.T + b1)
    return h @ w2.T + b2


if __name__ == "__main__":
    # Small shapes consistent with Model(input_size, output_size, hiddenSize).
    INPUT_SIZE, HIDDEN_SIZE, OUTPUT_SIZE = 16, 32, 8

    key = jax.random.PRNGKey(0)
    k_x1, k_w1, k_b1, k_w2, k_b2, k_x2, k_x3 = jax.random.split(key, 7)

    # PyTorch-Linear-style uniform init bounds.
    bound1 = 1.0 / (INPUT_SIZE ** 0.5)
    bound2 = 1.0 / (HIDDEN_SIZE ** 0.5)
    w1 = jax.random.uniform(k_w1, (HIDDEN_SIZE, INPUT_SIZE),
                            minval=-bound1, maxval=bound1, dtype=jnp.float32)
    b1 = jax.random.uniform(k_b1, (HIDDEN_SIZE,),
                            minval=-bound1, maxval=bound1, dtype=jnp.float32)
    w2 = jax.random.uniform(k_w2, (OUTPUT_SIZE, HIDDEN_SIZE),
                            minval=-bound2, maxval=bound2, dtype=jnp.float32)
    b2 = jax.random.uniform(k_b2, (OUTPUT_SIZE,),
                            minval=-bound2, maxval=bound2, dtype=jnp.float32)

    # One-time parameter prep (hoisted out of the per-call path).
    params_bf16 = prepare_params(w1, b1, w2, b2)                              # default bf16 MXU
    params_f32 = prepare_params(w1, b1, w2, b2, compute_dtype=jnp.float32)    # exact path

    # Case 1: tiny batch, single grid step, bf16 MXU inputs (default).
    B1 = 8
    x1 = jax.random.normal(k_x1, (B1, INPUT_SIZE), dtype=jnp.float32)
    y1 = jax.block_until_ready(mlp_forward(x1, params_bf16))
    assert y1.shape == (B1, OUTPUT_SIZE)
    assert jnp.allclose(y1, mlp_reference(x1, w1, b1, w2, b2), atol=3e-2, rtol=0)

    # Case 2: ragged batch, single grid step, f32 compute path -> tight tolerance.
    B2 = 48
    x2 = jax.random.normal(k_x2, (B2, INPUT_SIZE), dtype=jnp.float32)
    y2 = jax.block_until_ready(mlp_forward(x2, params_f32))
    assert y2.shape == (B2, OUTPUT_SIZE)
    assert jnp.allclose(y2, mlp_reference(x2, w1, b1, w2, b2), atol=1e-5, rtol=1e-5)

    # Case 3: forced multi-step grid (tb override) -> exercises batch tiling,
    # lane-dense (OUT, 128) output tiles, and the ragged-batch padding path.
    B3 = 200
    x3 = jax.random.normal(k_x3, (B3, INPUT_SIZE), dtype=jnp.float32)
    y3 = jax.block_until_ready(mlp_forward(x3, params_bf16, tb=128))
    assert y3.shape == (B3, OUTPUT_SIZE)
    assert jnp.allclose(y3, mlp_reference(x3, w1, b1, w2, b2), atol=3e-2, rtol=0)

    print("KERNEL_OK")
</pallas_src>

<mosaic_0001>
module attributes {stable_mosaic.version = 11 : i64} {
  func.func @mlp_kernel(%arg0: i32, %arg1: memref<8x16xf32, #tpu.memory_space<vmem>>, %arg2: memref<32x16xbf16, #tpu.memory_space<vmem>>, %arg3: memref<32x1xf32, #tpu.memory_space<vmem>>, %arg4: memref<8x32xbf16, #tpu.memory_space<vmem>>, %arg5: memref<8x1xf32, #tpu.memory_space<vmem>>, %arg6: memref<8x8xf32, #tpu.memory_space<vmem>>) attributes {dimension_semantics = [#tpu.dimension_semantics<parallel>], iteration_bounds = array<i64: 1>, scalar_prefetch = 0 : i64, scratch_operands = 0 : i64, tpu.core_type = #tpu.core_type<tc>, window_params = [{transform_indices = @transform_0, window_bounds = array<i64: 8, 16>}, {pipeline_mode = #tpu.pipeline_mode<synchronous>, transform_indices = @transform_1, window_bounds = array<i64: 32, 16>}, {pipeline_mode = #tpu.pipeline_mode<synchronous>, transform_indices = @transform_2, window_bounds = array<i64: 32, 1>}, {pipeline_mode = #tpu.pipeline_mode<synchronous>, transform_indices = @transform_3, window_bounds = array<i64: 8, 32>}, {pipeline_mode = #tpu.pipeline_mode<synchronous>, transform_indices = @transform_4, window_bounds = array<i64: 8, 1>}, {transform_indices = @transform_5, window_bounds = array<i64: 8, 8>}]} {
    %c0 = arith.constant 0 : index
    %c0_0 = arith.constant 0 : index
    %0 = vector.load %arg1[%c0, %c0_0] : memref<8x16xf32, #tpu.memory_space<vmem>>, vector<8x16xf32>
    %1 = arith.truncf %0 : vector<8x16xf32> to vector<8x16xbf16>
    %c0_1 = arith.constant 0 : index
    %c0_2 = arith.constant 0 : index
    %2 = vector.load %arg2[%c0_1, %c0_2] : memref<32x16xbf16, #tpu.memory_space<vmem>>, vector<32x16xbf16>
    %cst = arith.constant dense<0.000000e+00> : vector<32x8xf32>
    %3 = tpu.matmul %2, %1, %cst {dimension_numbers = #tpu.dot_dimension_numbers<[1], [1], [0], [0], [0, 0, 1, 0], [], []>} : vector<32x16xbf16>, vector<8x16xbf16>, vector<32x8xf32> -> vector<32x8xf32>
    %c0_3 = arith.constant 0 : index
    %c0_4 = arith.constant 0 : index
    %4 = vector.load %arg3[%c0_3, %c0_4] : memref<32x1xf32, #tpu.memory_space<vmem>>, vector<32x1xf32>
    %5 = vector.broadcast %4 : vector<32x1xf32> to vector<32x8xf32>
    %6 = arith.addf %3, %5 : vector<32x8xf32>
    %7 = math.tanh %6 : vector<32x8xf32>
    %c0_5 = arith.constant 0 : index
    %c0_6 = arith.constant 0 : index
    %8 = vector.load %arg4[%c0_5, %c0_6] : memref<8x32xbf16, #tpu.memory_space<vmem>>, vector<8x32xbf16>
    %9 = arith.truncf %7 : vector<32x8xf32> to vector<32x8xbf16>
    %cst_7 = arith.constant dense<0.000000e+00> : vector<8x8xf32>
    %10 = tpu.matmul %8, %9, %cst_7 {dimension_numbers = #tpu.dot_dimension_numbers<[1], [0], [0], [1], [0, 0, 1, 1], [], []>} : vector<8x32xbf16>, vector<32x8xbf16>, vector<8x8xf32> -> vector<8x8xf32>
    %c0_8 = arith.constant 0 : index
    %c0_9 = arith.constant 0 : index
    %11 = vector.load %arg5[%c0_8, %c0_9] : memref<8x1xf32, #tpu.memory_space<vmem>>, vector<8x1xf32>
    %12 = vector.broadcast %11 : vector<8x1xf32> to vector<8x8xf32>
    %13 = arith.addf %10, %12 : vector<8x8xf32>
    %c0_10 = arith.constant 0 : index
    %c0_11 = arith.constant 0 : index
    %14 = vector.load %arg6[%c0_10, %c0_11] : memref<8x8xf32, #tpu.memory_space<vmem>>, vector<8x8xf32>
    tpu.vector_store %arg6[%c0_10, %c0_11], %13 {strides = array<i32>} : memref<8x8xf32, #tpu.memory_space<vmem>>, vector<8x8xf32>,
    return
  }
  func.func @transform_0(%arg0: i32) -> (i32, i32) {
    %c0_i32 = arith.constant 0 : i32
    %c0_i32_0 = arith.constant 0 : i32
    return %arg0, %c0_i32 : i32, i32
  }
  func.func @transform_1(%arg0: i32) -> (i32, i32) {
    %c0_i32 = arith.constant 0 : i32
    %c0_i32_0 = arith.constant 0 : i32
    %c0_i32_1 = arith.constant 0 : i32
    return %c0_i32, %c0_i32_0 : i32, i32
  }
  func.func @transform_2(%arg0: i32) -> (i32, i32) {
    %c0_i32 = arith.constant 0 : i32
    %c0_i32_0 = arith.constant 0 : i32
    %c0_i32_1 = arith.constant 0 : i32
    return %c0_i32, %c0_i32_0 : i32, i32
  }
  func.func @transform_3(%arg0: i32) -> (i32, i32) {
    %c0_i32 = arith.constant 0 : i32
    %c0_i32_0 = arith.constant 0 : i32
    %c0_i32_1 = arith.constant 0 : i32
    return %c0_i32, %c0_i32_0 : i32, i32
  }
  func.func @transform_4(%arg0: i32) -> (i32, i32) {
    %c0_i32 = arith.constant 0 : i32
    %c0_i32_0 = arith.constant 0 : i32
    %c0_i32_1 = arith.constant 0 : i32
    return %c0_i32, %c0_i32_0 : i32, i32
  }
  func.func @transform_5(%arg0: i32) -> (i32, i32) {
    %c0_i32 = arith.constant 0 : i32
    %c0_i32_0 = arith.constant 0 : i32
    return %c0_i32, %arg0 : i32, i32
  }
}

</mosaic_0001>

<bundles_post_ra>
// kernel: tpu_custom_call.1
= control target key start
LH: loop header
LB: loop body
LE: loop exit
PB: predicated region body
PF: predicated region fallthrough
CT: control target
= control target key end

     0   :  { %vm62_vm0 = vcmask 130048   ;;  %v192_v2 = vmov 0   ;;  %s257_s0 = inlined_call_operand.vmem [shape: f32[8,16], index: 0, kind: input, shape index: {}]   ;;  %s258_s1 = inlined_call_operand.vmem [shape: bf16[32,16], index: 1, kind: input, shape index: {}]   ;;  %s259_s2 = inlined_call_operand.vmem [shape: f32[32,1], index: 2, kind: input, shape index: {}]   ;;  %s260_s3 = inlined_call_operand.vmem [shape: bf16[8,32], index: 3, kind: input, shape index: {}]   ;;  %s261_s4 = inlined_call_operand.vmem [shape: f32[8,1], index: 4, kind: input, shape index: {}]   ;;  %s262_s5 = inlined_call_operand.hbm [shape: f32[8,8], index: 5, kind: output, shape index: {}]  }
   0x1   :  { %v22_v0 = vld [vmem:[%s257_s0] sm:$0xff]  ;;  %155 = vset.pattern.permute.xlu0 %v192_v2  ;;  %v30_v3 = vld [vmem:[%s259_s2 + $0x10] sm:$0xff]  ;;  %156 = vset.pattern.permute.xlu1 %v192_v2 }
   0x2   :  { %v23_v1 = vpack.c.bf16 %v22_v0, %v22_v0  ;;  %v28_v4 = vld [vmem:[%s259_s2] sm:$0xff]  ;;  %44 = vperm.xlu0 %155, %v30_v3  }
   0x3   :  { %34 = vperm.xlu1 %156, %v28_v4  }
   0x4   :  { %10 = vsyncpa [#allocation3], 0  ;;  %v70_v5 = vsel %vm62_vm0, %v23_v1, 0  ;;  %157 = vset.pattern.permute.xlu2 %v192_v2  ;;  %v151_v6 = vld [vmem:[%s258_s1 + $0x8] sm:$0xff]  ;;  %v150_v7 = vld [vmem:[%s258_s1] sm:$0xff]  ;;  %vm104_vm1 = vcmask 261120  }
   0x5   :  { %152 = vmatpush.bf16.xpose.msra.mxu2 %v70_v5  ;;  %79 = vmatpush.bf16.xpose.msra.mxu0 %v70_v5  ;;  %v31_v8 = vld [vmem:[%s259_s2 + $0x18] sm:$0xff]  ;;  %v29_v9 = vld [vmem:[%s259_s2 + $0x8] sm:$0xff]  ;;  %v98_v10 = vld [vmem:[%s261_s4] sm:$0xff]  ;;  %s193_s4 = smov [#allocation2]   ;;  %s130_s11 = sshll.u32 %s262_s5, 4  ;;  %vm121_vm2 = vcmask 64512   ;;  %s131_s11 = int_to_ptr.hbm [resolvable:$true] %s130_s11 }
   0x6   :  { %101 = vperm.xlu2 %157, %v98_v10   ;;  %v95_v29 = vld [vmem:[%s260_s3] sm:$0xf]  ;;  %s128_s8 = sshll.u32 %s193_s4, 4  ;;  %s129_s8 = int_to_ptr.vmem [resolvable:$true] %s128_s8 }
   0xa   :  { %49 = vperm.xlu0 %155, %v31_v8  }
   0xb   :  { %39 = vperm.xlu1 %156, %v29_v9  }
   0xc   :  { %148 = vmatmul.msk.bf16.vlgmr.msra.gmra.mxu2 %vm62_vm0, %v151_v6  ;;  %147 = vmatmul.msk.bf16.vlgmr.msra.gmra.mxu0 %vm62_vm0, %v150_v7 }
  0x60   :  { %v102_v30 = vpop.permute.xlu2 %101 }
  0x74   :  { %v45_v13 = vpop.permute.xlu0 %44 }
  0x75   :  { %v35_v11 = vpop.permute.xlu1 %34 }
  0x7c   :  { %v50_v19 = vpop.permute.xlu0 %49 }
  0x7d   :  { %v40_v16 = vpop.permute.xlu1 %39 }
  0x89   :  { %v81_v12 = vpop.f32.mrf.mxu0 }
  0x8a   :  { %v82_v18 = vadd.f32 %v81_v12, %v35_v11 }
  0x8f   :  { %v86_v14 = vpop.f32.mrf.mxu2 }
  0x90   :  { %v87_v15 = vadd.f32 %v86_v14, %v45_v13 }
  0x91   :  { %v83_v17 = vpop.f32.mrf.mxu0 }
  0x92   :  { %v84_v21 = vadd.f32 %v83_v17, %v40_v16  ;;  %158 = vtanh.f32 %v87_v15 }
  0x97   :  { %v88_v20 = vpop.f32.mrf.mxu2 }
  0x98   :  { %v89_v22 = vadd.f32 %v88_v20, %v50_v19  ;;  %v159_v23 = vpop.eup %158 }
  0x9a   :  { %160 = vtanh.f32 %v89_v22 }
  0x9b   :  { %162 = vtanh.f32 %v82_v18 }
  0x9c   :  { %164 = vtanh.f32 %v84_v21 }
  0xa0   :  { %v161_v24 = vpop.eup %160 }
  0xa1   :  { %v163_v25 = vpop.eup %162  ;;  %v97_v26 = vpack.c.bf16 %v161_v24, %v159_v23 }
  0xa2   :  { %v165_v27 = vpop.eup %164 }
  0xa3   :  { %114 = vmatpush.bf16.msra.mxu1 %v97_v26  ;;  %v96_v28 = vpack.c.bf16 %v165_v27, %v163_v25 }
  0xa7   :  { %115 = vmatpush.bf16.msra.mxu1 %v96_v28 }
  0xaa   :  { %149 = vmatmul.msk.bf16.vlgmr.msra.gmra.mxu1 %vm104_vm1, %v95_v29 }
 0x127   :  { %v117_v31 = vpop.f32.mrf.mxu1 }
 0x128   :  { %v118_v32 = vadd.f32 %v117_v31, %v102_v30 }
 0x12a   :  { %122 = vst.msk [vmem:[#allocation2] sm:$0xff] %vm121_vm2, %v118_v32 }
 0x12b   :  { %133 = dma.vmem_to_hbm [thread:$0]  %s129_s8, 128, %s131_s11, [#allocation3]  }
 0x12f   :  { %v119_v33 = vpop.f32.mrf.mxu1 }
 0x130   :  { %190 = dma.done.wait [#allocation3], 128  }
 0x131   :  { %191 = vsyncadd [#allocation3], 4294967168 }
 0x132   :  { %138 = vsyncpa [#allocation3], 1 }

</bundles_post_ra>
